<compile_context>
chip_gen: v6e
topology: v6e:2x2x1
jax: 0.10.0
libtpu: 0.0.40
codegen_flags: <defaults>
</compile_context>

<pallas_src>
import numpy as np
import jax
import jax.numpy as jnp
from jax.experimental import pallas as pl
from jax.experimental.pallas import tpu as pltpu


# ----------------------------------------------------------------------------
# Pallas kernel: fused separable transform, all channels of one image per step
#   out[c] = A @ x[c] @ BT        (BT is the column transform, pre-transposed)
# ----------------------------------------------------------------------------
def _fused_sep_kernel(a_ref, bt_ref, x_ref, o_ref):
    # a_ref : (1, Hj, Hj)      per-batch-element composed row transform
    # bt_ref: (1, Wj, Wj)      per-batch-element composed column transform^T
    # x_ref : (1, C*Hj, Wj)    all channels of one (batch, scale) image
    # o_ref : (1, C*Hj, Wj)
    A = a_ref[0]
    BT = bt_ref[0]
    x = x_ref[0].astype(jnp.float32)
    Hj = A.shape[0]
    C = x.shape[0] // Hj

    # Column transform on the whole channel slab: (C*Hj, Wj) @ (Wj, Wj).
    # M = C*Hj keeps the MXU far better filled than one Hj-row matmul/channel.
    xw = jnp.dot(x, BT, preferred_element_type=jnp.float32)

    # Row transform per channel (C is small and static -> unrolled).
    # TODO(synk): crop/flip/translate compose into permutation rows; default
    # MXU precision is not bit-exact (~1e-3) for what the reference copies exactly.
    for c in range(C):
        seg = xw[c * Hj:(c + 1) * Hj, :]
        o_ref[0, pl.ds(c * Hj, Hj), :] = jnp.dot(
            A, seg, preferred_element_type=jnp.float32
        ).astype(o_ref.dtype)


def fused_sep_transform(x, A, BT):
    """out[b, c] = A[b] @ x[b, c] @ BT[b] for every (b, c).

    x : [B, C, Hj, Wj] float32
    A : [B, Hj, Hj]    float32
    BT: [B, Wj, Wj]    float32   (column transform, already transposed)
    returns [B, C, Hj, Wj] float32
    """
    B, C, Hj, Wj = x.shape
    x_flat = x.reshape(B, C * Hj, Wj)
    flops = 2 * B * C * Hj * Wj * (Wj + Hj)
    bytes_accessed = 4 * (2 * B * C * Hj * Wj + B * Hj * Hj + B * Wj * Wj)
    out = pl.pallas_call(
        _fused_sep_kernel,
        out_shape=jax.ShapeDtypeStruct((B, C * Hj, Wj), x.dtype),
        grid=(B,),
        in_specs=[
            pl.BlockSpec((1, Hj, Hj), lambda b: (b, 0, 0)),
            pl.BlockSpec((1, Wj, Wj), lambda b: (b, 0, 0)),
            pl.BlockSpec((1, C * Hj, Wj), lambda b: (b, 0, 0)),
        ],
        out_specs=pl.BlockSpec((1, C * Hj, Wj), lambda b: (b, 0, 0)),
        compiler_params=pltpu.CompilerParams(dimension_semantics=("parallel",)),
        cost_estimate=pl.CostEstimate(
            flops=flops, transcendentals=0, bytes_accessed=bytes_accessed),
    )(A, BT, x_flat)
    return out.reshape(B, C, Hj, Wj)


# ----------------------------------------------------------------------------
# Host-side (glue) construction of the tiny transform matrices
# ----------------------------------------------------------------------------
def resize_matrix(n_in, n_out):
    """Bilinear interpolation matrix (align_corners=False), [n_out, n_in]."""
    if n_in == n_out:
        return np.eye(n_out, dtype=np.float32)
    R = np.zeros((n_out, n_in), dtype=np.float32)
    for o in range(n_out):
        src = (o + 0.5) * n_in / n_out - 0.5
        i0 = int(np.floor(src))
        w1 = src - i0
        i0c = min(max(i0, 0), n_in - 1)
        i1c = min(max(i0 + 1, 0), n_in - 1)
        R[o, i0c] += 1.0 - w1
        R[o, i1c] += w1
    return R


def crop_matrix(n_in, off, size):
    """Selection matrix picking rows [off, off+size) of an n_in-long axis."""
    C = np.zeros((size, n_in), dtype=np.float32)
    for o in range(size):
        C[o, off + o] = 1.0
    return C


def flip_matrix(n):
    return np.eye(n, dtype=np.float32)[::-1].copy()


def translate_perm(n, margin_frac, toward_start):
    """Permutation matrix matching translate_h_fake / translate_v_fake.

    toward_start == True corresponds to direct_left / direct_up.
    """
    m = int(n * margin_frac)
    P = np.zeros((n, n), dtype=np.float32)
    if toward_start:
        for i in range(m, n):
            P[i, i - m] = 1.0
        for i in range(m):
            P[i, m - 1 - i] = 1.0
    else:
        for i in range(n - m):
            P[i, i + m] = 1.0
        for k in range(m):
            P[n - m + k, n - 1 - k] = 1.0
    return P


# ----------------------------------------------------------------------------
# The augmentation pipe
# ----------------------------------------------------------------------------
class AugmentPipeKorniaPallas:
    def __init__(self, prob, no_masks):
        self.prob = prob
        self.no_masks = no_masks

    def __call__(self, batch, seed=0):
        if not self.no_masks:
            raise ValueError(
                "Kornia augmentations without --no_masks regime is not supported")

        rng = np.random.RandomState(seed)
        x_list = batch["images"]              # list of L arrays [B, C, Hj, Wj]
        B, C, H, W = x_list[-1].shape         # sh = x[-1].shape (reference scale)

        # ----- per batch-element separable augmentation matrices acting on the
        # combine_fakes'd (H, W) canvas (same transform for all scales/channels
        # of a batch element, matching same_on_batch=True in the reference).
        MH = [np.eye(H, dtype=np.float32) for _ in range(B)]
        MW = [np.eye(W, dtype=np.float32) for _ in range(B)]

        # block 1: upsample to (2H, 2W) then RandomCrop back to (H, W)
        if rng.rand() < self.prob / 2:
            up_h = resize_matrix(H, 2 * H)
            up_w = resize_matrix(W, 2 * W)
            for i in range(B):
                oy = rng.randint(0, H + 1)
                ox = rng.randint(0, W + 1)
                MH[i] = crop_matrix(2 * H, oy, H) @ up_h @ MH[i]
                MW[i] = crop_matrix(2 * W, ox, W) @ up_w @ MW[i]

        # block 2: RandomCrop+resize  OR  RandomRotation+CenterCrop+resize
        if rng.rand() < self.prob:
            if rng.rand() < 0.5:
                r = rng.rand() * 0.25 + 0.75
                h0, w0 = int(H * r), int(W * r)
                for i in range(B):
                    oy = rng.randint(0, H - h0 + 1)
                    ox = rng.randint(0, W - w0 + 1)
                    MH[i] = resize_matrix(h0, H) @ crop_matrix(H, oy, h0) @ MH[i]
                    MW[i] = resize_matrix(w0, W) @ crop_matrix(W, ox, w0) @ MW[i]
            else:
                # TODO(synk): kornia RandomRotation is a non-separable 2D resample
                # with no clean separable-matmul Pallas mapping; only the
                # CenterCrop(0.8) + resize part of this branch is applied.
                h0, w0 = int(H * 0.8), int(W * 0.8)
                oy, ox = (H - h0) // 2, (W - w0) // 2
                for i in range(B):
                    MH[i] = resize_matrix(h0, H) @ crop_matrix(H, oy, h0) @ MH[i]
                    MW[i] = resize_matrix(w0, W) @ crop_matrix(W, ox, w0) @ MW[i]

        # block 3: horizontal flip (p=1.0 inside the gate)
        if rng.rand() < self.prob:
            Fw = flip_matrix(W)
            for i in range(B):
                MW[i] = Fw @ MW[i]

        # block 4: translate_v_fake (per-element random margin / direction)
        if rng.rand() < self.prob:
            for i in range(B):
                margin = rng.rand() * (0.3 - 0.05) + 0.05
                direct_up = bool(rng.rand() < 0.5)
                MH[i] = translate_perm(H, margin, direct_up) @ MH[i]

        # block 5: translate_h_fake
        if rng.rand() < self.prob:
            for i in range(B):
                margin = rng.rand() * (0.3 - 0.05) + 0.05
                direct_left = bool(rng.rand() < 0.5)
                MW[i] = translate_perm(W, margin, direct_left) @ MW[i]

        # ----- fuse combine_fakes -> augment -> detach_fakes per scale by
        # composing the matrices host-side, then run a single Pallas launch per
        # scale over the whole batch on the original-resolution images.
        # (For tiny scales the output is narrower than 128 lanes -> masked
        # stores, but those scales carry only a few KB; the reference scale is
        # lane-dense whenever W >= 128.)
        out_list = []
        for xj in x_list:
            _, _, Hj, Wj = xj.shape
            Rh_fwd = resize_matrix(Hj, H)     # [H, Hj]  combine_fakes (up to H)
            Rh_back = resize_matrix(H, Hj)    # [Hj, H]  detach_fakes (back to Hj)
            Rw_fwd = resize_matrix(Wj, W)     # [W, Wj]
            Rw_back = resize_matrix(W, Wj)    # [Wj, W]
            A_j = np.stack(
                [Rh_back @ MH[b] @ Rh_fwd for b in range(B)]).astype(np.float32)
            BT_j = np.stack(
                [(Rw_back @ MW[b] @ Rw_fwd).T for b in range(B)]).astype(np.float32)
            oj = fused_sep_transform(
                jnp.asarray(xj, dtype=jnp.float32),
                jnp.asarray(A_j),
                jnp.asarray(BT_j))
            out_list.append(oj)

        batch["image"] = out_list   # reference writes the singular key 'image'
        return batch


# ----------------------------------------------------------------------------
if __name__ == "__main__":
    key = jax.random.PRNGKey(0)
    B, C = 2, 4
    scales = [(4, 4), (8, 8), (16, 16)]   # multi-scale "fakes", last is reference
    keys = jax.random.split(key, len(scales))
    images = [
        jax.random.normal(k, (B, C, h, w), dtype=jnp.float32)
        for k, (h, w) in zip(keys, scales)
    ]

    pipe = AugmentPipeKorniaPallas(prob=1.0, no_masks=True)
    batch = {"images": images}
    out = pipe(batch, seed=0)

    for arr in out["image"]:
        jax.block_until_ready(arr)

    # sanity: output list mirrors the input multi-scale shapes
    assert [tuple(a.shape) for a in out["image"]] == [tuple(x.shape) for x in images]
    assert all(bool(jnp.all(jnp.isfinite(a))) for a in out["image"])
    print("KERNEL_OK")
</pallas_src>

<mosaic_0001>
module attributes {stable_mosaic.version = 11 : i64} {
  func.func @_fused_sep_kernel(%arg0: i32, %arg1: memref<1x4x4xf32, #tpu.memory_space<vmem>>, %arg2: memref<1x4x4xf32, #tpu.memory_space<vmem>>, %arg3: memref<1x16x4xf32, #tpu.memory_space<vmem>>, %arg4: memref<1x16x4xf32, #tpu.memory_space<vmem>>) attributes {dimension_semantics = [#tpu.dimension_semantics<parallel>], iteration_bounds = array<i64: 2>, scalar_prefetch = 0 : i64, scratch_operands = 0 : i64, tpu.core_type = #tpu.core_type<tc>, window_params = [{transform_indices = @transform_0, window_bounds = array<i64: 1, 4, 4>}, {transform_indices = @transform_1, window_bounds = array<i64: 1, 4, 4>}, {transform_indices = @transform_2, window_bounds = array<i64: 1, 16, 4>}, {transform_indices = @transform_3, window_bounds = array<i64: 1, 16, 4>}]} {
    %c0 = arith.constant 0 : index
    %c0_0 = arith.constant 0 : index
    %c0_1 = arith.constant 0 : index
    %0 = vector.load %arg1[%c0, %c0_0, %c0_1] : memref<1x4x4xf32, #tpu.memory_space<vmem>>, vector<1x4x4xf32>
    %1 = vector.shape_cast %0 : vector<1x4x4xf32> to vector<4x4xf32>
    %c0_2 = arith.constant 0 : index
    %c0_3 = arith.constant 0 : index
    %c0_4 = arith.constant 0 : index
    %2 = vector.load %arg2[%c0_2, %c0_3, %c0_4] : memref<1x4x4xf32, #tpu.memory_space<vmem>>, vector<1x4x4xf32>
    %3 = vector.shape_cast %2 : vector<1x4x4xf32> to vector<4x4xf32>
    %c0_5 = arith.constant 0 : index
    %c0_6 = arith.constant 0 : index
    %c0_7 = arith.constant 0 : index
    %4 = vector.load %arg3[%c0_5, %c0_6, %c0_7] : memref<1x16x4xf32, #tpu.memory_space<vmem>>, vector<1x16x4xf32>
    %5 = vector.shape_cast %4 : vector<1x16x4xf32> to vector<16x4xf32>
    %cst = arith.constant dense<0.000000e+00> : vector<16x4xf32>
    %6 = tpu.matmul %5, %3, %cst {dimension_numbers = #tpu.dot_dimension_numbers<[1], [0], [0], [1], [0, 0, 1, 1], [], []>} : vector<16x4xf32>, vector<4x4xf32>, vector<16x4xf32> -> vector<16x4xf32>
    %7 = vector.extract_strided_slice %6 {offsets = [0, 0], sizes = [4, 4], strides = [1, 1]} : vector<16x4xf32> to vector<4x4xf32>
    %cst_8 = arith.constant dense<0.000000e+00> : vector<4x4xf32>
    %8 = tpu.matmul %1, %7, %cst_8 {dimension_numbers = #tpu.dot_dimension_numbers<[1], [0], [0], [1], [0, 0, 1, 1], [], []>} : vector<4x4xf32>, vector<4x4xf32>, vector<4x4xf32> -> vector<4x4xf32>
    %c0_9 = arith.constant 0 : index
    %c0_10 = arith.constant 0 : index
    %c0_11 = arith.constant 0 : index
    %9 = vector.load %arg4[%c0_9, %c0_10, %c0_11] : memref<1x16x4xf32, #tpu.memory_space<vmem>>, vector<1x4x4xf32>
    %10 = vector.shape_cast %9 : vector<1x4x4xf32> to vector<4x4xf32>
    %11 = vector.shape_cast %8 : vector<4x4xf32> to vector<1x4x4xf32>
    tpu.vector_store %arg4[%c0_9, %c0_10, %c0_11], %11 {strides = array<i32>} : memref<1x16x4xf32, #tpu.memory_space<vmem>>, vector<1x4x4xf32>,
    %12 = vector.extract_strided_slice %6 {offsets = [4, 0], sizes = [4, 4], strides = [1, 1]} : vector<16x4xf32> to vector<4x4xf32>
    %cst_12 = arith.constant dense<0.000000e+00> : vector<4x4xf32>
    %13 = tpu.matmul %1, %12, %cst_12 {dimension_numbers = #tpu.dot_dimension_numbers<[1], [0], [0], [1], [0, 0, 1, 1], [], []>} : vector<4x4xf32>, vector<4x4xf32>, vector<4x4xf32> -> vector<4x4xf32>
    %c0_13 = arith.constant 0 : index
    %c4 = arith.constant 4 : index
    %c0_14 = arith.constant 0 : index
    %14 = vector.load %arg4[%c0_13, %c4, %c0_14] : memref<1x16x4xf32, #tpu.memory_space<vmem>>, vector<1x4x4xf32>
    %15 = vector.shape_cast %14 : vector<1x4x4xf32> to vector<4x4xf32>
    %16 = vector.shape_cast %13 : vector<4x4xf32> to vector<1x4x4xf32>
    tpu.vector_store %arg4[%c0_13, %c4, %c0_14], %16 {strides = array<i32>} : memref<1x16x4xf32, #tpu.memory_space<vmem>>, vector<1x4x4xf32>,
    %17 = vector.extract_strided_slice %6 {offsets = [8, 0], sizes = [4, 4], strides = [1, 1]} : vector<16x4xf32> to vector<4x4xf32>
    %cst_15 = arith.constant dense<0.000000e+00> : vector<4x4xf32>
    %18 = tpu.matmul %1, %17, %cst_15 {dimension_numbers = #tpu.dot_dimension_numbers<[1], [0], [0], [1], [0, 0, 1, 1], [], []>} : vector<4x4xf32>, vector<4x4xf32>, vector<4x4xf32> -> vector<4x4xf32>
    %c0_16 = arith.constant 0 : index
    %c8 = arith.constant 8 : index
    %c0_17 = arith.constant 0 : index
    %19 = vector.load %arg4[%c0_16, %c8, %c0_17] : memref<1x16x4xf32, #tpu.memory_space<vmem>>, vector<1x4x4xf32>
    %20 = vector.shape_cast %19 : vector<1x4x4xf32> to vector<4x4xf32>
    %21 = vector.shape_cast %18 : vector<4x4xf32> to vector<1x4x4xf32>
    tpu.vector_store %arg4[%c0_16, %c8, %c0_17], %21 {strides = array<i32>} : memref<1x16x4xf32, #tpu.memory_space<vmem>>, vector<1x4x4xf32>,
    %22 = vector.extract_strided_slice %6 {offsets = [12, 0], sizes = [4, 4], strides = [1, 1]} : vector<16x4xf32> to vector<4x4xf32>
    %cst_18 = arith.constant dense<0.000000e+00> : vector<4x4xf32>
    %23 = tpu.matmul %1, %22, %cst_18 {dimension_numbers = #tpu.dot_dimension_numbers<[1], [0], [0], [1], [0, 0, 1, 1], [], []>} : vector<4x4xf32>, vector<4x4xf32>, vector<4x4xf32> -> vector<4x4xf32>
    %c0_19 = arith.constant 0 : index
    %c12 = arith.constant 12 : index
    %c0_20 = arith.constant 0 : index
    %24 = vector.load %arg4[%c0_19, %c12, %c0_20] : memref<1x16x4xf32, #tpu.memory_space<vmem>>, vector<1x4x4xf32>
    %25 = vector.shape_cast %24 : vector<1x4x4xf32> to vector<4x4xf32>
    %26 = vector.shape_cast %23 : vector<4x4xf32> to vector<1x4x4xf32>
    tpu.vector_store %arg4[%c0_19, %c12, %c0_20], %26 {strides = array<i32>} : memref<1x16x4xf32, #tpu.memory_space<vmem>>, vector<1x4x4xf32>,
    return
  }
  func.func @transform_0(%arg0: i32) -> (i32, i32, i32) {
    %c0_i32 = arith.constant 0 : i32
    %c0_i32_0 = arith.constant 0 : i32
    %c0_i32_1 = arith.constant 0 : i32
    return %arg0, %c0_i32, %c0_i32_0 : i32, i32, i32
  }
  func.func @transform_1(%arg0: i32) -> (i32, i32, i32) {
    %c0_i32 = arith.constant 0 : i32
    %c0_i32_0 = arith.constant 0 : i32
    %c0_i32_1 = arith.constant 0 : i32
    return %arg0, %c0_i32, %c0_i32_0 : i32, i32, i32
  }
  func.func @transform_2(%arg0: i32) -> (i32, i32, i32) {
    %c0_i32 = arith.constant 0 : i32
    %c0_i32_0 = arith.constant 0 : i32
    %c0_i32_1 = arith.constant 0 : i32
    return %arg0, %c0_i32, %c0_i32_0 : i32, i32, i32
  }
  func.func @transform_3(%arg0: i32) -> (i32, i32, i32) {
    %c0_i32 = arith.constant 0 : i32
    %c0_i32_0 = arith.constant 0 : i32
    %c0_i32_1 = arith.constant 0 : i32
    return %arg0, %c0_i32, %c0_i32_0 : i32, i32, i32
  }
}

</mosaic_0001>

<bundles_post_ra>
// kernel: tpu_custom_call.1
= control target key start
LH: loop header
LB: loop body
LE: loop exit
PB: predicated region body
PF: predicated region fallthrough
CT: control target
= control target key end

     0   :  { %s776_s12 = smov 0   ;;  %s823_s0 = inlined_call_operand.vmem [shape: f32[2,4,4], index: 0, kind: input, shape index: {}]   ;;  %s824_s1 = inlined_call_operand.vmem [shape: f32[2,4,4], index: 1, kind: input, shape index: {}]   ;;  %s825_s2 = inlined_call_operand.vmem [shape: f32[2,16,4], index: 2, kind: input, shape index: {}]   ;;  %s826_s3 = inlined_call_operand.vmem [shape: f32[2,16,4], index: 3, kind: output, shape index: {}]  }
   0x1 LB: > { %s674_s13 = sadd.s32 4294967295, %s752_s12   ;;  %p678_p0 = scmp.ge.s32.totalorder %s752_s12, 1  ;;  %s752_s12 = sphi %s776_s12, %s13_s12  }
   0x2   : > { %p155_p1 = scmp.lt.s32.totalorder %s752_s12, 3 }
   0x4   : > { %p156_p2 = pnand %p678_p0, %p155_p1 }
   0x5   : > { %p187_p3 = scmp.lt.s32.totalorder (!%p156_p2), %s674_s13, 1 }
   0x6   : > { %159 = sbr.rel (%p156_p2) target bundleno = 414 (0x19e), region = 32 }
   0xb   : > { %s828_s13 = smov (!%p187_p3, %s674_s13), 1  ;;  %vm216_vm0 = vcmask 1043456   ;;  %vm209_vm1 = vcmask 31744   ;;  %v754_v3 = vmov 0.0   ;;  %vm755_vm2 = vmmov 0  }
   0xc   : > { %s679_s14 = sshll.u32 %s828_s13, 2  ;;  %s698_s15 = sshll.u32 %s828_s13, 4  ;;  %716 = vmatprep.subr.mxu1 %v754_v3  ;;  %718 = vmatprep.mubr.msk.f32.mxu1 %vm755_vm2, %v754_v3  ;;  %vm371_vm3 = vcmask 27648  }
   0xd   : > { %s194_s18 = scalar_lea.vmem %s824_s1, %s679_s14  ;;  %s199_s21 = scalar_lea.vmem %s825_s2, %s698_s15 }
   0xe   : > { %v206_v0 = vld [vmem:[%s194_s18] sm:$0xf]  ;;  %v208_v2 = vld [vmem:[%s199_s21 + $0x8] sm:$0xff]  ;;  %s190_s24 = scalar_lea.vmem %s823_s0, %s679_s14  ;;  %s204_s27 = scalar_lea.vmem %s826_s3, %s698_s15 }
   0xf   : > { %711 = vmatprep.subr.msk.mxu0 %vm216_vm0, %v206_v0  ;;  %v207_v1 = vld [vmem:[%s199_s21] sm:$0xff] }
  0x10   : > { %712 = vmatpush3.msk.msra.mxu0 %vm216_vm0, %v206_v0  ;;  %713 = vmatprep.mubr.msk.f32.mxu0 %vm209_vm1, %v207_v1  ;;  %v205_v5 = vld [vmem:[%s190_s24] sm:$0xf] }
  0x11   : > { %714 = vmatmul.mubr.msk.f32.vlgmr.msra.gmra.mxu0 %vm209_vm1, %v208_v2  ;;  %721 = vmatprep.subr.mxu0 %v754_v3 }
  0x12   : > { %723 = vmatprep.mubr.msk.f32.mxu0 %vm755_vm2, %v754_v3 }
  0xd1   : > { %v715_v4 = vpop.f32.mrf.mxu0 }
  0xd2   : > { %v521_v8 = vrot.slane %v715_v4, 4 }
  0xd3   : > { %v286_v6 = vpop.f32.mrf.mxu0 }
  0xd4   : > { %v373_v7 = vrot.slane %v286_v6, 4  ;;  %717 = vmatpush3.msk.msra.mxu1 %vm216_vm0, %v286_v6 }
  0xd5   : > { %726 = vmatprep.subr.mxu1 %v754_v3  ;;  %719 = vmatmul.mubr.msk.f32.vlgmr.msra.gmra.mxu1 %vm209_vm1, %v205_v5 }
  0xd6   : > { %722 = vmatpush3.msk.msra.mxu0 %vm216_vm0, %v373_v7  ;;  %727 = vmatpush3.msk.msra.mxu1 %vm216_vm0, %v715_v4 }
  0xd7   : > { %731 = vmatprep.subr.mxu0 %v754_v3  ;;  %724 = vmatmul.mubr.msk.f32.vlgmr.msra.gmra.mxu0 %vm209_vm1, %v205_v5 }
  0xd8   : > { %732 = vmatpush3.msk.msra.mxu0 %vm216_vm0, %v521_v8  ;;  %728 = vmatprep.mubr.msk.f32.mxu1 %vm755_vm2, %v754_v3 }
  0xd9   : > { %733 = vmatprep.mubr.msk.f32.mxu0 %vm755_vm2, %v754_v3  ;;  %729 = vmatmul.mubr.msk.f32.vlgmr.msra.gmra.mxu1 %vm209_vm1, %v205_v5 }
  0xdb   : > { %734 = vmatmul.mubr.msk.f32.vlgmr.msra.gmra.mxu0 %vm209_vm1, %v205_v5 }
 0x195   : > { %v367_v9 = vpop.f32.mrf.mxu1 }
 0x196   : > { %372 = vst.msk [vmem:[%s204_s27] sm:$0xf] %vm371_vm3, %v367_v9 }
 0x197   : > { %v442_v10 = vpop.f32.mrf.mxu0  ;;  %v720_v11 = vpop.f32.mrf.mxu1 }
 0x198   : > { %446 = vst.msk [vmem:[%s204_s27 + $0x4] sm:$0xf] %vm371_vm3, %v442_v10 }
 0x199   : > { %v725_v12 = vpop.f32.mrf.mxu0  ;;  %v516_v13 = vpop.f32.mrf.mxu1 }
 0x19a   : > { %520 = vst.msk [vmem:[%s204_s27 + $0x8] sm:$0xf] %vm371_vm3, %v516_v13 }
 0x19b   : > { %v590_v14 = vpop.f32.mrf.mxu0  ;;  %v730_v15 = vpop.f32.mrf.mxu1 }
 0x19c   : > { %594 = vst.msk [vmem:[%s204_s27 + $0xc] sm:$0xf] %vm371_vm3, %v590_v14 }
 0x19d   : > { %v735_v16 = vpop.f32.mrf.mxu0 }
 0x19e PF: > { %s13_s12 = sadd.s32 1, %s752_s12  }
 0x19f   : > { %p10_p4 = scmp.ge.s32.totalorder %s13_s12, 4  }
 0x1a1   :  { %12 = sbr.rel (!%p10_p4) target bundleno = 1 (0x1), region = 68 }

</bundles_post_ra>
